<compile_context>
chip_gen: v5e
topology: v5e:2x2
jax: 0.10.0
libtpu: 0.0.40
codegen_flags: <defaults>
</compile_context>

<pallas_src>
import functools

import jax
import jax.numpy as jnp
from jax.experimental import pallas as pl
from jax.experimental.pallas import tpu as pltpu


def _round_up(x, m):
    return ((x + m - 1) // m) * m


def _cdiv(a, b):
    return (a + b - 1) // b


def _leaky_relu(x, slope=0.1):
    # slope < 1  =>  max(x, slope*x) == LeakyReLU(slope); single VPU max.
    return jnp.maximum(x, slope * x)


def mlp_generator_kernel(x_ref,
                         w1_ref, b1_ref,
                         w2_ref, b2_ref,
                         w3_ref, b3_ref,
                         w4_ref, b4_ref,
                         o_ref):
    """Fused 4-layer MLP, one batch tile per grid step.

    x arrives as an unpadded f32 tile and is cast to bf16 in-kernel; weights
    are bf16 (VMEM-resident, ~0.5 MB total); biases/activations accumulate in
    f32 (preferred_element_type); output is stored lane-dense in bf16.
    """
    x = x_ref[...].astype(jnp.bfloat16)

    # layer 1: (bt, 110) @ (110, 512)  -- Mosaic pads K internally
    h = jnp.dot(x, w1_ref[...], preferred_element_type=jnp.float32) + b1_ref[...]
    h = _leaky_relu(h)

    # layer 2: (bt, 512) @ (512, 256)
    h = jnp.dot(h.astype(jnp.bfloat16), w2_ref[...],
                preferred_element_type=jnp.float32) + b2_ref[...]
    h = _leaky_relu(h)

    # layer 3: (bt, 256) @ (256, 128)
    h = jnp.dot(h.astype(jnp.bfloat16), w3_ref[...],
                preferred_element_type=jnp.float32) + b3_ref[...]
    h = _leaky_relu(h)

    # layer 4 (lane-dense padded output): (bt, 128) @ (128, 128), bf16 store
    o_ref[...] = (jnp.dot(h.astype(jnp.bfloat16), w4_ref[...],
                          preferred_element_type=jnp.float32)
                  + b4_ref[...]).astype(o_ref.dtype)


def _pick_batch_tile(B, batch_tile_cap):
    """Static batch-tile choice: large tiles, >=2 grid steps when splittable."""
    cap = max(16, _round_up(batch_tile_cap, 16))
    if B > 2 * cap:
        return cap
    # Split mid-size batches into two blocks so v7x's two TensorCores both work.
    return max(16, _round_up(_cdiv(B, 2), 16))


def mlp_generator_forward(x, prepared_params, n_c, *, batch_tile=1024):
    """x: (B, feat_data + n_c) f32.  Returns (B, n_c) class scores, f32."""
    (w1, b1), (w2, b2), (w3, b3), (w4_p, b4_p) = prepared_params
    B, d_in = x.shape
    n_out_p = w4_p.shape[1]                       # n_c padded to 128 lanes

    bt = _pick_batch_tile(B, batch_tile)
    grid = (pl.cdiv(B, bt),)                      # partial last block is masked

    def full_spec(shape):
        # full-array block, constant index -> fetched once, resident in VMEM
        return pl.BlockSpec(shape, lambda i, _n=len(shape): (0,) * _n)

    out = pl.pallas_call(
        mlp_generator_kernel,
        out_shape=jax.ShapeDtypeStruct((B, n_out_p), jnp.bfloat16),
        grid_spec=pltpu.PrefetchScalarGridSpec(
            num_scalar_prefetch=0,
            grid=grid,
            in_specs=[
                # last dim == full feature dim (110): no 128-divisibility needed
                pl.BlockSpec((bt, d_in), lambda i: (i, 0)),
                full_spec(w1.shape), full_spec(b1.shape),
                full_spec(w2.shape), full_spec(b2.shape),
                full_spec(w3.shape), full_spec(b3.shape),
                full_spec(w4_p.shape), full_spec(b4_p.shape),
            ],
            out_specs=pl.BlockSpec((bt, n_out_p), lambda i: (i, 0)),
        ),
        compiler_params=pltpu.CompilerParams(
            dimension_semantics=("parallel",),
            vmem_limit_bytes=48 * 1024 * 1024,   # headroom for big tiles on v5e
        ),
    )(x, w1, b1, w2, b2, w3, b3, w4_p, b4_p)

    return out[:, :n_c].astype(jnp.float32)


def init_mlp_generator_params(key, feat_data=100, n_c=10):
    """PyTorch nn.Linear default init: U(-1/sqrt(fan_in), 1/sqrt(fan_in)).

    Returns f32 master params: weights (in, out), biases (1, out).
    """
    dims = [feat_data + n_c, 512, 256, 128, n_c]
    params = []
    for l in range(4):
        fan_in, fan_out = dims[l], dims[l + 1]
        key, kw, kb = jax.random.split(key, 3)
        bound = 1.0 / jnp.sqrt(jnp.float32(fan_in))
        w = jax.random.uniform(kw, (fan_in, fan_out), jnp.float32, -bound, bound)
        b = jax.random.uniform(kb, (1, fan_out), jnp.float32, -bound, bound)
        params.append((w, b))
    return params


def prepare_mlp_generator_params(params, n_c):
    """One-time: cast weights to bf16 (MXU-native) and pad the final layer's
    output lanes n_c -> 128 so the kernel's output store is lane-dense."""
    (w1, b1), (w2, b2), (w3, b3), (w4, b4) = params
    n_out_p = _round_up(n_c, 128)
    w4_p = jnp.pad(w4, ((0, 0), (0, n_out_p - n_c)))
    b4_p = jnp.pad(b4, ((0, 0), (0, n_out_p - n_c)))
    return ((w1.astype(jnp.bfloat16), b1),
            (w2.astype(jnp.bfloat16), b2),
            (w3.astype(jnp.bfloat16), b3),
            (w4_p.astype(jnp.bfloat16), b4_p))


def mlp_generator_reference(x, params):
    """Plain-JAX f32 reference (HIGHEST precision).  Weights are roundtripped
    through bf16 to match the kernel's bf16 weight storage."""
    h = x.astype(jnp.float32)
    for w, b in params[:3]:
        w_eff = w.astype(jnp.bfloat16).astype(jnp.float32)
        h = jnp.dot(h, w_eff, precision=jax.lax.Precision.HIGHEST) + b
        h = jnp.where(h > 0, h, 0.1 * h)
    w4, b4 = params[3]
    w4_eff = w4.astype(jnp.bfloat16).astype(jnp.float32)
    return jnp.dot(h, w4_eff, precision=jax.lax.Precision.HIGHEST) + b4


if __name__ == "__main__":
    feat_data = 100
    n_c = 10
    batch = 10          # deliberately not a multiple of 16: exercises masked partial block

    key = jax.random.PRNGKey(0)
    key, kx = jax.random.split(key)
    x = jax.random.normal(kx, (batch, feat_data + n_c), jnp.float32)

    params = init_mlp_generator_params(jax.random.PRNGKey(0),
                                       feat_data=feat_data, n_c=n_c)
    prepared = prepare_mlp_generator_params(params, n_c)

    fwd = jax.jit(functools.partial(mlp_generator_forward, n_c=n_c,
                                    batch_tile=1024))
    out = fwd(x, prepared)
    out = jax.block_until_ready(out)

    ref = mlp_generator_reference(x, params)
    assert out.shape == (batch, n_c), out.shape
    # bf16 operands / bf16 output store with f32 accumulation vs f32/HIGHEST ref.
    assert jnp.allclose(out, ref, atol=3e-2, rtol=3e-2), (
        "mismatch vs reference: max abs diff = %f"
        % float(jnp.max(jnp.abs(out - ref))))

    print("KERNEL_OK")
</pallas_src>

<mosaic_0001>
module attributes {stable_mosaic.version = 11 : i64} {
  func.func @mlp_generator_kernel(%arg0: i32, %arg1: memref<16x110xf32, #tpu.memory_space<vmem>>, %arg2: memref<110x512xbf16, #tpu.memory_space<vmem>>, %arg3: memref<1x512xf32, #tpu.memory_space<vmem>>, %arg4: memref<512x256xbf16, #tpu.memory_space<vmem>>, %arg5: memref<1x256xf32, #tpu.memory_space<vmem>>, %arg6: memref<256x128xbf16, #tpu.memory_space<vmem>>, %arg7: memref<1x128xf32, #tpu.memory_space<vmem>>, %arg8: memref<128x128xbf16, #tpu.memory_space<vmem>>, %arg9: memref<1x128xf32, #tpu.memory_space<vmem>>, %arg10: memref<16x128xbf16, #tpu.memory_space<vmem>>) attributes {dimension_semantics = [#tpu.dimension_semantics<parallel>], iteration_bounds = array<i64: 1>, scalar_prefetch = 0 : i64, scratch_operands = 0 : i64, tpu.core_type = #tpu.core_type<tc>, window_params = [{transform_indices = @transform_0, window_bounds = array<i64: 16, 110>}, {pipeline_mode = #tpu.pipeline_mode<synchronous>, transform_indices = @transform_1, window_bounds = array<i64: 110, 512>}, {pipeline_mode = #tpu.pipeline_mode<synchronous>, transform_indices = @transform_2, window_bounds = array<i64: 1, 512>}, {pipeline_mode = #tpu.pipeline_mode<synchronous>, transform_indices = @transform_3, window_bounds = array<i64: 512, 256>}, {pipeline_mode = #tpu.pipeline_mode<synchronous>, transform_indices = @transform_4, window_bounds = array<i64: 1, 256>}, {pipeline_mode = #tpu.pipeline_mode<synchronous>, transform_indices = @transform_5, window_bounds = array<i64: 256, 128>}, {pipeline_mode = #tpu.pipeline_mode<synchronous>, transform_indices = @transform_6, window_bounds = array<i64: 1, 128>}, {pipeline_mode = #tpu.pipeline_mode<synchronous>, transform_indices = @transform_7, window_bounds = array<i64: 128, 128>}, {pipeline_mode = #tpu.pipeline_mode<synchronous>, transform_indices = @transform_8, window_bounds = array<i64: 1, 128>}, {transform_indices = @transform_9, window_bounds = array<i64: 16, 128>}]} {
    %c0 = arith.constant 0 : index
    %c0_0 = arith.constant 0 : index
    %0 = vector.load %arg1[%c0, %c0_0] : memref<16x110xf32, #tpu.memory_space<vmem>>, vector<16x110xf32>
    %1 = arith.truncf %0 : vector<16x110xf32> to vector<16x110xbf16>
    %c0_1 = arith.constant 0 : index
    %c0_2 = arith.constant 0 : index
    %2 = vector.load %arg2[%c0_1, %c0_2] : memref<110x512xbf16, #tpu.memory_space<vmem>>, vector<110x512xbf16>
    %cst = arith.constant dense<0.000000e+00> : vector<16x512xf32>
    %3 = tpu.matmul %1, %2, %cst {dimension_numbers = #tpu.dot_dimension_numbers<[1], [0], [0], [1], [0, 0, 1, 1], [], []>} : vector<16x110xbf16>, vector<110x512xbf16>, vector<16x512xf32> -> vector<16x512xf32>
    %c0_3 = arith.constant 0 : index
    %c0_4 = arith.constant 0 : index
    %4 = vector.load %arg3[%c0_3, %c0_4] : memref<1x512xf32, #tpu.memory_space<vmem>>, vector<1x512xf32>
    %5 = vector.broadcast %4 : vector<1x512xf32> to vector<16x512xf32>
    %6 = arith.addf %3, %5 : vector<16x512xf32>
    %cst_5 = arith.constant 1.000000e-01 : f32
    %7 = vector.broadcast %cst_5 : f32 to vector<16x512xf32>
    %8 = arith.mulf %7, %6 : vector<16x512xf32>
    %9 = arith.maximumf %6, %8 : vector<16x512xf32>
    %10 = arith.truncf %9 : vector<16x512xf32> to vector<16x512xbf16>
    %c0_6 = arith.constant 0 : index
    %c0_7 = arith.constant 0 : index
    %11 = vector.load %arg4[%c0_6, %c0_7] : memref<512x256xbf16, #tpu.memory_space<vmem>>, vector<512x256xbf16>
    %cst_8 = arith.constant dense<0.000000e+00> : vector<16x256xf32>
    %12 = tpu.matmul %10, %11, %cst_8 {dimension_numbers = #tpu.dot_dimension_numbers<[1], [0], [0], [1], [0, 0, 1, 1], [], []>} : vector<16x512xbf16>, vector<512x256xbf16>, vector<16x256xf32> -> vector<16x256xf32>
    %c0_9 = arith.constant 0 : index
    %c0_10 = arith.constant 0 : index
    %13 = vector.load %arg5[%c0_9, %c0_10] : memref<1x256xf32, #tpu.memory_space<vmem>>, vector<1x256xf32>
    %14 = vector.broadcast %13 : vector<1x256xf32> to vector<16x256xf32>
    %15 = arith.addf %12, %14 : vector<16x256xf32>
    %cst_11 = arith.constant 1.000000e-01 : f32
    %16 = vector.broadcast %cst_11 : f32 to vector<16x256xf32>
    %17 = arith.mulf %16, %15 : vector<16x256xf32>
    %18 = arith.maximumf %15, %17 : vector<16x256xf32>
    %19 = arith.truncf %18 : vector<16x256xf32> to vector<16x256xbf16>
    %c0_12 = arith.constant 0 : index
    %c0_13 = arith.constant 0 : index
    %20 = vector.load %arg6[%c0_12, %c0_13] : memref<256x128xbf16, #tpu.memory_space<vmem>>, vector<256x128xbf16>
    %cst_14 = arith.constant dense<0.000000e+00> : vector<16x128xf32>
    %21 = tpu.matmul %19, %20, %cst_14 {dimension_numbers = #tpu.dot_dimension_numbers<[1], [0], [0], [1], [0, 0, 1, 1], [], []>} : vector<16x256xbf16>, vector<256x128xbf16>, vector<16x128xf32> -> vector<16x128xf32>
    %c0_15 = arith.constant 0 : index
    %c0_16 = arith.constant 0 : index
    %22 = vector.load %arg7[%c0_15, %c0_16] : memref<1x128xf32, #tpu.memory_space<vmem>>, vector<1x128xf32>
    %23 = vector.broadcast %22 : vector<1x128xf32> to vector<16x128xf32>
    %24 = arith.addf %21, %23 : vector<16x128xf32>
    %cst_17 = arith.constant 1.000000e-01 : f32
    %25 = vector.broadcast %cst_17 : f32 to vector<16x128xf32>
    %26 = arith.mulf %25, %24 : vector<16x128xf32>
    %27 = arith.maximumf %24, %26 : vector<16x128xf32>
    %28 = arith.truncf %27 : vector<16x128xf32> to vector<16x128xbf16>
    %c0_18 = arith.constant 0 : index
    %c0_19 = arith.constant 0 : index
    %29 = vector.load %arg8[%c0_18, %c0_19] : memref<128x128xbf16, #tpu.memory_space<vmem>>, vector<128x128xbf16>
    %cst_20 = arith.constant dense<0.000000e+00> : vector<16x128xf32>
    %30 = tpu.matmul %28, %29, %cst_20 {dimension_numbers = #tpu.dot_dimension_numbers<[1], [0], [0], [1], [0, 0, 1, 1], [], []>} : vector<16x128xbf16>, vector<128x128xbf16>, vector<16x128xf32> -> vector<16x128xf32>
    %c0_21 = arith.constant 0 : index
    %c0_22 = arith.constant 0 : index
    %31 = vector.load %arg9[%c0_21, %c0_22] : memref<1x128xf32, #tpu.memory_space<vmem>>, vector<1x128xf32>
    %32 = vector.broadcast %31 : vector<1x128xf32> to vector<16x128xf32>
    %33 = arith.addf %30, %32 : vector<16x128xf32>
    %34 = arith.truncf %33 : vector<16x128xf32> to vector<16x128xbf16>
    %c0_23 = arith.constant 0 : index
    %c0_24 = arith.constant 0 : index
    %35 = vector.load %arg10[%c0_23, %c0_24] : memref<16x128xbf16, #tpu.memory_space<vmem>>, vector<16x128xbf16>
    tpu.vector_store %arg10[%c0_23, %c0_24], %34 {strides = array<i32>} : memref<16x128xbf16, #tpu.memory_space<vmem>>, vector<16x128xbf16>,
    return
  }
  func.func @transform_0(%arg0: i32) -> (i32, i32) {
    %c0_i32 = arith.constant 0 : i32
    %c0_i32_0 = arith.constant 0 : i32
    return %arg0, %c0_i32 : i32, i32
  }
  func.func @transform_1(%arg0: i32) -> (i32, i32) {
    %c0_i32 = arith.constant 0 : i32
    %c0_i32_0 = arith.constant 0 : i32
    %c0_i32_1 = arith.constant 0 : i32
    return %c0_i32, %c0_i32_0 : i32, i32
  }
  func.func @transform_2(%arg0: i32) -> (i32, i32) {
    %c0_i32 = arith.constant 0 : i32
    %c0_i32_0 = arith.constant 0 : i32
    %c0_i32_1 = arith.constant 0 : i32
    return %c0_i32, %c0_i32_0 : i32, i32
  }
  func.func @transform_3(%arg0: i32) -> (i32, i32) {
    %c0_i32 = arith.constant 0 : i32
    %c0_i32_0 = arith.constant 0 : i32
    %c0_i32_1 = arith.constant 0 : i32
    return %c0_i32, %c0_i32_0 : i32, i32
  }
  func.func @transform_4(%arg0: i32) -> (i32, i32) {
    %c0_i32 = arith.constant 0 : i32
    %c0_i32_0 = arith.constant 0 : i32
    %c0_i32_1 = arith.constant 0 : i32
    return %c0_i32, %c0_i32_0 : i32, i32
  }
  func.func @transform_5(%arg0: i32) -> (i32, i32) {
    %c0_i32 = arith.constant 0 : i32
    %c0_i32_0 = arith.constant 0 : i32
    %c0_i32_1 = arith.constant 0 : i32
    return %c0_i32, %c0_i32_0 : i32, i32
  }
  func.func @transform_6(%arg0: i32) -> (i32, i32) {
    %c0_i32 = arith.constant 0 : i32
    %c0_i32_0 = arith.constant 0 : i32
    %c0_i32_1 = arith.constant 0 : i32
    return %c0_i32, %c0_i32_0 : i32, i32
  }
  func.func @transform_7(%arg0: i32) -> (i32, i32) {
    %c0_i32 = arith.constant 0 : i32
    %c0_i32_0 = arith.constant 0 : i32
    %c0_i32_1 = arith.constant 0 : i32
    return %c0_i32, %c0_i32_0 : i32, i32
  }
  func.func @transform_8(%arg0: i32) -> (i32, i32) {
    %c0_i32 = arith.constant 0 : i32
    %c0_i32_0 = arith.constant 0 : i32
    %c0_i32_1 = arith.constant 0 : i32
    return %c0_i32, %c0_i32_0 : i32, i32
  }
  func.func @transform_9(%arg0: i32) -> (i32, i32) {
    %c0_i32 = arith.constant 0 : i32
    %c0_i32_0 = arith.constant 0 : i32
    return %arg0, %c0_i32 : i32, i32
  }
}

</mosaic_0001>

<bundles_post_ra>
// kernel: mlp_generator_forward.1
= control target key start
LH: loop header
LB: loop body
LE: loop exit
PB: predicated region body
PF: predicated region fallthrough
CT: control target
= control target key end

     0   :  { %14 = vsyncpa [#allocation3], 0  ;;  %s2033_s0 = inlined_call_operand.hbm [shape: f32[10,110], index: 0, kind: input, shape index: {}]   ;;  %s2034_s1 = inlined_call_operand.hbm [shape: bf16[110,512], index: 1, kind: input, shape index: {}]   ;;  %s2035_s2 = inlined_call_operand.hbm [shape: f32[1,512], index: 2, kind: input, shape index: {}]   ;;  %s2036_s3 = inlined_call_operand.hbm [shape: bf16[512,256], index: 3, kind: input, shape index: {}]   ;;  %s2037_s4 = inlined_call_operand.vmem [shape: f32[1,256], index: 4, kind: input, shape index: {}]   ;;  %s2038_s5 = inlined_call_operand.hbm [shape: bf16[256,128], index: 5, kind: input, shape index: {}]   ;;  %s2039_s6 = inlined_call_operand.vmem [shape: f32[1,128], index: 6, kind: input, shape index: {}]   ;;  %s2040_s7 = inlined_call_operand.hbm [shape: bf16[128,128], index: 7, kind: input, shape index: {}]   ;;  %s2041_s8 = inlined_call_operand.vmem [shape: f32[1,128], index: 8, kind: input, shape index: {}]   ;;  %s2042_s9 = inlined_call_operand.vmem [shape: bf16[10,128], index: 9, kind: output, shape index: {}]  }
   0x1   :  { %15 = vsyncpa [#allocation5], 0 }
   0x2   :  { %16 = vsyncpa [#allocation8], 0  ;;  %s35_s11 = sshll.u32 %s2034_s1, 4  ;;  %s36_s11 = int_to_ptr.hbm [resolvable:$true] %s35_s11 }
   0x3   :  { %17 = vsyncpa [#allocation11], 0  ;;  %s1921_s12 = smov [#allocation4]   ;;  %s1922_s14 = smov 256  }
   0x4   :  { %s37_s13 = sshll.u32 %s1921_s12, 4  ;;  %s1923_s15 = smov 16   ;;  %s38_s13 = int_to_ptr.vmem [resolvable:$true] %s37_s13 }
   0x5   :  { %43 = dma.hbm_to_vmem [thread:$0]  %s36_s11, 3584, %s38_s13, [#allocation5], %s1922_s14, %s1922_s14, %s1923_s15  }
   0x6   :  { %s59_s18 = sshll.u32 %s2036_s3, 4  ;;  %s1924_s19 = smov [#allocation7]   ;;  %s60_s18 = int_to_ptr.hbm [resolvable:$true] %s59_s18 }
   0x7   :  { %s61_s20 = sshll.u32 %s1924_s19, 4  ;;  %s22_s23 = sshll.u32 %s2033_s0, 4  ;;  %s62_s20 = int_to_ptr.vmem [resolvable:$true] %s61_s20  ;;  %s23_s23 = int_to_ptr.hbm [resolvable:$true] %s22_s23 }
   0x8   :  { %s1925_s1 = smov 128   ;;  %s1926_s24 = smov 8  }
   0x9   :  { %67 = dma.hbm_to_vmem [thread:$0]  %s60_s18, 8192, %s62_s20, [#allocation8], %s1925_s1, %s1925_s1, %s1926_s24  }
   0xa   :  { %s49_s27 = sshll.u32 %s2035_s2, 4  ;;  %s1927_s28 = smov [#allocation2]   ;;  %s50_s27 = int_to_ptr.hbm [resolvable:$true] %s49_s27 }
   0xb   :  { %s24_s29 = sshll.u32 %s1927_s28, 4  ;;  %s1928_s3 = smov [#allocation6]   ;;  %s25_s29 = int_to_ptr.vmem [resolvable:$true] %s24_s29 }
   0xc   :  { %30 = dma.hbm_to_vmem [thread:$0]  %s23_s23, 256, %s25_s29, [#allocation3], %s1925_s1, %s1925_s1, %s1926_s24  }
   0xd   :  { %s51_s30 = sshll.u32 %s1928_s3, 4  ;;  %s74_s0 = sshll.u32 %s2038_s5, 4  ;;  %s52_s30 = int_to_ptr.vmem [resolvable:$true] %s51_s30  ;;  %s75_s0 = int_to_ptr.hbm [resolvable:$true] %s74_s0 }
   0xe   :  { %54 = dma.hbm_to_vmem [thread:$0]  %s50_s27, 64, %s52_s30, [#allocation5]  }
   0xf   :  { %s1929_s12 = smov [#allocation9]   ;;  %s89_s2 = sshll.u32 %s2040_s7, 4  ;;  %s90_s2 = int_to_ptr.hbm [resolvable:$true] %s89_s2 }
  0x10   :  { %s76_s13 = sshll.u32 %s1929_s12, 4  ;;  %s1930_s16 = smov 64   ;;  %s77_s13 = int_to_ptr.vmem [resolvable:$true] %s76_s13 }
  0x11   :  { %s1931_s17 = smov 4   ;;  %s1932_s18 = smov [#allocation10]  }
  0x12   :  { %82 = dma.hbm_to_vmem [thread:$0]  %s75_s0, 2048, %s77_s13, [#allocation8], %s1930_s16, %s1930_s16, %s1931_s17  }
  0x13   :  { %s91_s19 = sshll.u32 %s1932_s18, 4  ;;  %s92_s19 = int_to_ptr.vmem [resolvable:$true] %s91_s19 }
  0x14   :  { %97 = dma.hbm_to_vmem [thread:$0]  %s90_s2, 1024, %s92_s19, [#allocation11], %s1930_s16, %s1930_s16, %s1931_s17  }
  0x15   :  { %1913 = dma.done.wait [#allocation3], 256  }
  0x16   :  { %1914 = vsyncadd [#allocation3], 4294967040 }
  0x17   :  { %1915 = dma.done.wait [#allocation5], 3648  }
  0x18   :  { %1916 = vsyncadd [#allocation5], 4294963648 }
  0x19   :  { %1917 = dma.done.wait [#allocation8], 10240  }
  0x1a   :  { %1918 = vsyncadd [#allocation8], 4294957056 }
  0x1b   :  { %1919 = dma.done.wait [#allocation11], 1024  }
  0x1c   :  { %1920 = vsyncadd [#allocation11], 4294966272  ;;  %vm306_vm0 = vcmask 1046528   ;;  %v1264_v0 = vld [vmem:[#allocation4 + $0xc0] sm:$0xf]  ;;  %vm302_vm1 = vcmask 900096  }
  0x1d   :  { %v1660_v1 = vld [vmem:[#allocation4 + $0xcc] sm:$0x70]  ;;  %v1658_v2 = vld [vmem:[#allocation4 + $0xc4] sm:$0xf]  ;;  %v1266_v4 = vld [vmem:[#allocation4 + $0xd0] sm:$0x70] }
  0x1e   :  { %v1265_v3 = vor.u32 %v1660_v1, %v1264_v0  ;;  %v1272_v5 = vld [vmem:[#allocation4 + $0xc8] sm:$0xf]  ;;  %v1661_v6 = vld [vmem:[#allocation4 + $0xd4] sm:$0x70]  ;;  %v1269_v7 = vor.u32 %v1658_v2, %v1266_v4  ;;  %v1248_v9 = vld [vmem:[#allocation4 + $0xa0] sm:$0xf] }
  0x1f   :  { %v1273_v8 = vor.u32 %v1661_v6, %v1272_v5  ;;  %v1656_v10 = vld [vmem:[#allocation4 + $0xac] sm:$0xf0]  ;;  %v1654_v11 = vld [vmem:[#allocation4 + $0xa4] sm:$0xf]  ;;  %v1250_v13 = vld [vmem:[#allocation4 + $0xb0] sm:$0xf0] }
  0x20   :  { %v308_v12 = vsel %vm306_vm0, %v1265_v3, 0  ;;  %v1256_v14 = vld [vmem:[#allocation4 + $0xa8] sm:$0xf]  ;;  %v311_v15 = vsel %vm306_vm0, %v1269_v7, 0  ;;  %v1249_v17 = vor.u32 %v1656_v10, %v1248_v9  ;;  %v1657_v18 = vld [vmem:[#allocation4 + $0xb4] sm:$0xf0]  ;;  %v1253_v19 = vor.u32 %v1654_v11, %v1250_v13 }
  0x21   :  { %320 = vmatpush.bf16.msra.mxu3 %v308_v12  ;;  %v314_v16 = vsel %vm306_vm0, %v1273_v8, 0  ;;  %334 = vmatpush.bf16.msra.mxu1 %v311_v15  ;;  %v1257_v20 = vor.u32 %v1657_v18, %v1256_v14  ;;  %v1232_v21 = vld [vmem:[#allocation4 + $0x80] sm:$0xf]  ;;  %v1652_v22 = vld [vmem:[#allocation4 + $0x8c] sm:$0xf0]  ;;  %v126_v4 = vld [vmem:[#allocation2 + $0x8] sm:$0xff] }
  0x22   :  { %348 = vmatpush.bf16.msra.mxu2 %v314_v16  ;;  %v1650_v23 = vld [vmem:[#allocation4 + $0x84] sm:$0xf]  ;;  %v1234_v24 = vld [vmem:[#allocation4 + $0x90] sm:$0xf0]  ;;  %v1240_v25 = vld [vmem:[#allocation4 + $0x88] sm:$0xf]  ;;  %v1233_v27 = vor.u32 %v1652_v22, %v1232_v21 }
  0x23   :  { %v1653_v26 = vld [vmem:[#allocation4 + $0x94] sm:$0xf0]  ;;  %v1237_v28 = vor.u32 %v1650_v23, %v1234_v24  ;;  %v1216_v30 = vld [vmem:[#allocation4 + $0x60] sm:$0xf]  ;;  %v1648_v31 = vld [vmem:[#allocation4 + $0x6c] sm:$0xf0] }
  0x24   :  { %v1241_v29 = vor.u32 %v1653_v26, %v1240_v25  ;;  %v1646_v32 = vld [vmem:[#allocation4 + $0x64] sm:$0xf]  ;;  %v1218_v33 = vld [vmem:[#allocation4 + $0x70] sm:$0xf0]  ;;  %v1224_v34 = vld [vmem:[#allocation4 + $0x68] sm:$0xf]  ;;  %v1217_v36 = vor.u32 %v1648_v31, %v1216_v30 }
  0x25   :  { %321 = vmatpush.bf16.msra.mxu3 %v1249_v17  ;;  %335 = vmatpush.bf16.msra.mxu1 %v1253_v19  ;;  %v1649_v35 = vld [vmem:[#allocation4 + $0x74] sm:$0xf0]  ;;  %v1221_v37 = vor.u32 %v1646_v32, %v1218_v33  ;;  %v1200_v39 = vld [vmem:[#allocation4 + $0x40] sm:$0xf]  ;;  %v1644_v40 = vld [vmem:[#allocation4 + $0x4c] sm:$0xf0] }
  0x26   :  { %349 = vmatpush.bf16.msra.mxu2 %v1257_v20  ;;  %v1225_v38 = vor.u32 %v1649_v35, %v1224_v34  ;;  %v1642_v41 = vld [vmem:[#allocation4 + $0x44] sm:$0xf]  ;;  %v1202_v42 = vld [vmem:[#allocation4 + $0x50] sm:$0xf0]  ;;  %v1208_v43 = vld [vmem:[#allocation4 + $0x48] sm:$0xf]  ;;  %v1201_v45 = vor.u32 %v1644_v40, %v1200_v39 }
  0x27   :  { %v1645_v44 = vld [vmem:[#allocation4 + $0x54] sm:$0xf0]  ;;  %v1184_v46 = vld [vmem:[#allocation4 + $0x20] sm:$0xf]  ;;  %v1640_v47 = vld [vmem:[#allocation4 + $0x2c] sm:$0xf0]  ;;  %v1205_v48 = vor.u32 %v1642_v41, %v1202_v42 }
  0x28   :  { %v1209_v49 = vor.u32 %v1645_v44, %v1208_v43  ;;  %v1638_v50 = vld [vmem:[#allocation4 + $0x24] sm:$0xf]  ;;  %v1186_v51 = vld [vmem:[#allocation4 + $0x30] sm:$0xf0]  ;;  %v1192_v52 = vld [vmem:[#allocation4 + $0x28] sm:$0xf]  ;;  %v1185_v56 = vor.u32 %v1640_v47, %v1184_v46 }
  0x29   :  { %322 = vmatpush.bf16.msra.mxu3 %v1233_v27  ;;  %336 = vmatpush.bf16.msra.mxu1 %v1237_v28  ;;  %v1641_v53 = vld [vmem:[#allocation4 + $0x34] sm:$0xf0]  ;;  %v1659_v54 = vld [vmem:[#allocation4 + $0xcc] sm:$0xf]  ;;  %v1274_v55 = vld [vmem:[#allocation4 + $0xd8] sm:$0x70]  ;;  %v1189_v57 = vor.u32 %v1638_v50, %v1186_v51 }
  0x2a   :  { %350 = vmatpush.bf16.msra.mxu2 %v1241_v29  ;;  %v1193_v58 = vor.u32 %v1641_v53, %v1192_v52  ;;  %v1168_v59 = vld [vmem:[#allocation4] sm:$0xf]  ;;  %v1636_v60 = vld [vmem:[#allocation4 + $0xc] sm:$0xf0]  ;;  %v1634_v61 = vld [vmem:[#allocation4 + $0x4] sm:$0xf]  ;;  %v1277_v62 = vor.u32 %v1659_v54, %v1274_v55 }
  0x2b   :  { %v1170_v63 = vld [vmem:[#allocation4 + $0x10] sm:$0xf0]  ;;  %v1176_v0 = vld [vmem:[#allocation4 + $0x8] sm:$0xf]  ;;  %v1637_v1 = vld [vmem:[#allocation4 + $0x14] sm:$0xf0]  ;;  %v1169_v2 = vor.u32 %v1636_v60, %v1168_v59 }
  0x2c   :  { %v125_v3 = vld [vmem:[#allocation2] sm:$0xff]  ;;  %v1173_v5 = vor.u32 %v1634_v61, %v1170_v63  ;;  %v1177_v6 = vor.u32 %v1637_v1, %v1176_v0  ;;  %v317_v7 = vsel %vm306_vm0, %v1277_v62, 0  ;;  %v1655_v8 = vld [vmem:[#allocation4 + $0xac] sm:$0xf]  ;;  %v1258_v9 = vld [vmem:[#allocation4 + $0xb8] sm:$0xf0] }
  0x2d   :  { %323 = vmatpush.bf16.msra.mxu3 %v1217_v36  ;;  %337 = vmatpush.bf16.msra.mxu1 %v1221_v37  ;;  %v1404_v10 = vld [vmem:[#allocation7 + $0xf0] sm:$0xf]  ;;  %v1693_v11 = vld [vmem:[#allocation7 + $0xf4] sm:$0xf0]  ;;  %v1396_v13 = vld [vmem:[#allocation7 + $0xe0] sm:$0xf]  ;;  %v2005_v16 = vpack.c.bf16 %v126_v4, %v125_v3  ;;  %v1261_v24 = vor.u32 %v1655_v8, %v1258_v9 }
  0x2e   :  { %351 = vmatpush.bf16.msra.mxu2 %v1225_v38  ;;  %v1405_v12 = vor.u32 %v1693_v11, %v1404_v10  ;;  %v1340_v14 = vld [vmem:[#allocation7 + $0x70] sm:$0xf]  ;;  %v1677_v15 = vld [vmem:[#allocation7 + $0x74] sm:$0xf0]  ;;  %v1691_v17 = vld [vmem:[#allocation7 + $0xe4] sm:$0xf0] }
  0x2f   :  { %v1341_v18 = vor.u32 %v1677_v15, %v1340_v14  ;;  %v1468_v19 = vld [vmem:[#allocation7 + $0x170] sm:$0xf]  ;;  %v1709_v20 = vld [vmem:[#allocation7 + $0x174] sm:$0xf0]  ;;  %v1332_v21 = vld [vmem:[#allocation7 + $0x60] sm:$0xf]  ;;  %v1397_v26 = vor.u32 %v1691_v17, %v1396_v13 }
  0x30   :  { %v1675_v22 = vld [vmem:[#allocation7 + $0x64] sm:$0xf0]  ;;  %v1469_v23 = vor.u32 %v1709_v20, %v1468_v19  ;;  %v1460_v27 = vld [vmem:[#allocation7 + $0x160] sm:$0xf]  ;;  %v1242_v29 = vld [vmem:[#allocation4 + $0x98] sm:$0xf0] }
  0x31   :  { %324 = vmatpush.bf16.msra.mxu3 %v1201_v45  ;;  %338 = vmatpush.bf16.msra.mxu1 %v1205_v48  ;;  %v1651_v25 = vld [vmem:[#allocation4 + $0x8c] sm:$0xf]  ;;  %v1388_v30 = vld [vmem:[#allocation7 + $0xd0] sm:$0xf]  ;;  %v1689_v31 = vld [vmem:[#allocation7 + $0xd4] sm:$0xf0]  ;;  %v1333_v32 = vor.u32 %v1675_v22, %v1332_v21 }
  0x32   :  { %352 = vmatpush.bf16.msra.mxu2 %v1209_v49  ;;  %v1707_v28 = vld [vmem:[#allocation7 + $0x164] sm:$0xf0]  ;;  %785 = vmatpush.bf16.msra.mxu0 %v1341_v18  ;;  %v1324_v33 = vld [vmem:[#allocation7 + $0x50] sm:$0xf]  ;;  %v1673_v34 = vld [vmem:[#allocation7 + $0x54] sm:$0xf0]  ;;  %v1245_v36 = vor.u32 %v1651_v25, %v1242_v29  ;;  %v1389_v38 = vor.u32 %v1689_v31, %v1388_v30 }
  0x33   :  { %v1461_v35 = vor.u32 %v1707_v28, %v1460_v27  ;;  %v1647_v37 = vld [vmem:[#allocation4 + $0x6c] sm:$0xf]  ;;  %v1452_v39 = vld [vmem:[#allocation7 + $0x150] sm:$0xf]  ;;  %v1705_v40 = vld [vmem:[#allocation7 + $0x154] sm:$0xf0]  ;;  %v1325_v44 = vor.u32 %v1673_v34, %v1324_v33 }
  0x34   :  { %v1226_v41 = vld [vmem:[#allocation4 + $0x78] sm:$0xf0]  ;;  %v1380_v42 = vld [vmem:[#allocation7 + $0xc0] sm:$0xf]  ;;  %v1687_v43 = vld [vmem:[#allocation7 + $0xc4] sm:$0xf0]  ;;  %v1453_v47 = vor.u32 %v1705_v40, %v1452_v39 }
  0x35   :  { %325 = vmatpush.bf16.msra.mxu3 %v1185_v56  ;;  %339 = vmatpush.bf16.msra.mxu1 %v1189_v57  ;;  %v1316_v45 = vld [vmem:[#allocation7 + $0x40] sm:$0xf]  ;;  %v1671_v46 = vld [vmem:[#allocation7 + $0x44] sm:$0xf0]  ;;  %v1229_v48 = vor.u32 %v1647_v37, %v1226_v41  ;;  %v1381_v50 = vor.u32 %v1687_v43, %v1380_v42  ;;  %v1210_v53 = vld [vmem:[#allocation4 + $0x58] sm:$0xf0] }
  0x36   :  { %353 = vmatpush.bf16.msra.mxu2 %v1193_v58  ;;  %786 = vmatpush.bf16.msra.mxu0 %v1333_v32  ;;  %v1643_v49 = vld [vmem:[#allocation4 + $0x4c] sm:$0xf]  ;;  %v1444_v51 = vld [vmem:[#allocation7 + $0x140] sm:$0xf]  ;;  %v1372_v54 = vld [vmem:[#allocation7 + $0xb0] sm:$0xf]  ;;  %v1317_v56 = vor.u32 %v1671_v46, %v1316_v45 }
  0x37   :  { %v1703_v52 = vld [vmem:[#allocation7 + $0x144] sm:$0xf0]  ;;  %v1685_v55 = vld [vmem:[#allocation7 + $0xb4] sm:$0xf0]  ;;  %v1308_v57 = vld [vmem:[#allocation7 + $0x30] sm:$0xf]  ;;  %v1213_v60 = vor.u32 %v1643_v49, %v1210_v53 }
  0x38   :  { %v1669_v58 = vld [vmem:[#allocation7 + $0x34] sm:$0xf0]  ;;  %v1445_v59 = vor.u32 %v1703_v52, %v1444_v51  ;;  %v1639_v61 = vld [vmem:[#allocation4 + $0x2c] sm:$0xf]  ;;  %v1373_v62 = vor.u32 %v1685_v55, %v1372_v54  ;;  %v1436_v63 = vld [vmem:[#allocation7 + $0x130] sm:$0xf] }
  0x39   :  { %326 = vmatpush.bf16.msra.mxu3 %v1169_v2  ;;  %340 = vmatpush.bf16.msra.mxu1 %v1173_v5  ;;  %v1701_v0 = vld [vmem:[#allocation7 + $0x134] sm:$0xf0]  ;;  %v1364_v2 = vld [vmem:[#allocation7 + $0xa0] sm:$0xf]  ;;  %v1683_v3 = vld [vmem:[#allocation7 + $0xa4] sm:$0xf0]  ;;  %v1309_v4 = vor.u32 %v1669_v58, %v1308_v57 }
  0x3a   :  { %354 = vmatpush.bf16.msra.mxu2 %v1177_v6  ;;  %787 = vmatpush.bf16.msra.mxu0 %v1325_v44  ;;  %v1194_v1 = vld [vmem:[#allocation4 + $0x38] sm:$0xf0]  ;;  %v1300_v5 = vld [vmem:[#allocation7 + $0x20] sm:$0xf]  ;;  %v1667_v6 = vld [vmem:[#allocation7 + $0x24] sm:$0xf0]  ;;  %v1365_v10 = vor.u32 %v1683_v3, %v1364_v2 }
  0x3b   :  { %v1197_v8 = vor.u32 %v1639_v61, %v1194_v1  ;;  %v1635_v9 = vld [vmem:[#allocation4 + $0xc] sm:$0xf]  ;;  %v1428_v11 = vld [vmem:[#allocation7 + $0x120] sm:$0xf]  ;;  %v1178_v13 = vld [vmem:[#allocation4 + $0x18] sm:$0xf0]  ;;  %v1301_v17 = vor.u32 %v1667_v6, %v1300_v5 }
  0x3c   :  { %1278 = vmatmul.msk.bf16.vlgmr.msra.gmra.mxu3 %vm302_vm1, %v2005_v16  ;;  %1279 = vmatmul.msk.bf16.vlgmr.msra.gmra.mxu1 %vm302_vm1, %v2005_v16  ;;  %v1356_v14 = vld [vmem:[#allocation7 + $0x90] sm:$0xf]  ;;  %v1681_v15 = vld [vmem:[#allocation7 + $0x94] sm:$0xf0]  ;;  %v1181_v19 = vor.u32 %v1635_v9, %v1178_v13  ;;  %v1348_v21 = vld [vmem:[#allocation7 + $0x80] sm:$0xf] }
  0x3d   :  { %362 = vmatpush.bf16.msrb.mxu3 %v317_v7  ;;  %799 = vmatpush.bf16.msrb.mxu1 %v1405_v12  ;;  %v1437_v7 = vor.u32 %v1701_v0, %v1436_v63  ;;  %v1699_v12 = vld [vmem:[#allocation7 + $0x124] sm:$0xf0]  ;;  %v1357_v20 = vor.u32 %v1681_v15, %v1356_v14  ;;  %v1406_v25 = vld [vmem:[#allocation7 + $0xf8] sm:$0xf0]  ;;  %v1292_v27 = vld [vmem:[#allocation7 + $0x10] sm:$0xf] }
  0x3e   :  { %1280 = vmatmul.msk.bf16.vlgmr.msra.gmra.mxu2 %vm302_vm1, %v2005_v16  ;;  %788 = vmatpush.bf16.msra.mxu0 %v1317_v56  ;;  %v1429_v18 = vor.u32 %v1699_v12, %v1428_v11  ;;  %v1679_v22 = vld [vmem:[#allocation7 + $0x84] sm:$0xf0]  ;;  %v1665_v28 = vld [vmem:[#allocation7 + $0x14] sm:$0xf0]  ;;  %v1420_v29 = vld [vmem:[#allocation7 + $0x110] sm:$0xf] }
  0x3f   :  { %813 = vmatpush.bf16.msrb.mxu2 %v1469_v23  ;;  %v1349_v23 = vor.u32 %v1679_v22, %v1348_v21  ;;  %v1293_v30 = vor.u32 %v1665_v28, %v1292_v27  ;;  %v1697_v31 = vld [vmem:[#allocation7 + $0x114] sm:$0xf0]  ;;  %v1532_v32 = vld [vmem:[#allocation7 + $0x1f0] sm:$0xf]  ;;  %v1663_v39 = vld [vmem:[#allocation7 + $0x4] sm:$0xf0] }
  0x40   :  { %v1725_v33 = vld [vmem:[#allocation7 + $0x1f4] sm:$0xf0]  ;;  %v1421_v34 = vor.u32 %v1697_v31, %v1420_v29  ;;  %v1412_v40 = vld [vmem:[#allocation7 + $0x100] sm:$0xf]  ;;  %v1695_v42 = vld [vmem:[#allocation7 + $0x104] sm:$0xf0] }
  0x41   :  { %363 = vmatpush.bf16.msrb.mxu3 %v1261_v24  ;;  %800 = vmatpush.bf16.msrb.mxu1 %v1397_v26  ;;  %v1692_v24 = vld [vmem:[#allocation7 + $0xf4] sm:$0xf]  ;;  %v1524_v43 = vld [vmem:[#allocation7 + $0x1e0] sm:$0xf]  ;;  %v1413_v44 = vor.u32 %v1695_v42, %v1412_v40  ;;  %v1723_v45 = vld [vmem:[#allocation7 + $0x1e4] sm:$0xf0] }
  0x42   :  { %789 = vmatpush.bf16.msra.mxu0 %v1309_v4  ;;  %v1409_v26 = vor.u32 %v1692_v24, %v1406_v25  ;;  %v1676_v46 = vld [vmem:[#allocation7 + $0x74] sm:$0xf]  ;;  %v1470_v51 = vld [vmem:[#allocation7 + $0x178] sm:$0xf0]  ;;  %v1516_v56 = vld [vmem:[#allocation7 + $0x1d0] sm:$0xf] }
  0x43   :  { %814 = vmatpush.bf16.msrb.mxu2 %v1461_v35  ;;  %v1533_v35 = vor.u32 %v1725_v33, %v1532_v32  ;;  %v1688_v52 = vld [vmem:[#allocation7 + $0xd4] sm:$0xf]  ;;  %v1390_v54 = vld [vmem:[#allocation7 + $0xd8] sm:$0xf0]  ;;  %v1721_v57 = vld [vmem:[#allocation7 + $0x1d4] sm:$0xf0] }
  0x44   :  { %v1393_v55 = vor.u32 %v1688_v52, %v1390_v54  ;;  %v1674_v58 = vld [vmem:[#allocation7 + $0x64] sm:$0xf]  ;;  %v1462_v63 = vld [vmem:[#allocation7 + $0x168] sm:$0xf0]  ;;  %v1508_v4 = vld [vmem:[#allocation7 + $0x1c0] sm:$0xf] }
  0x45   :  { %364 = vmatpush.bf16.msrb.mxu3 %v1245_v36  ;;  %801 = vmatpush.bf16.msrb.mxu1 %v1389_v38  ;;  %v1690_v36 = vld [vmem:[#allocation7 + $0xe4] sm:$0xf]  ;;  %v1284_v38 = vld [vmem:[#allocation7] sm:$0xf]  ;;  %v1382_v1 = vld [vmem:[#allocation7 + $0xc8] sm:$0xf0] }
  0x46   :  { %790 = vmatpush.bf16.msra.mxu0 %v1301_v17  ;;  %v1285_v41 = vor.u32 %v1663_v39, %v1284_v38  ;;  %v1706_v61 = vld [vmem:[#allocation7 + $0x164] sm:$0xf]  ;;  %v1719_v5 = vld [vmem:[#allocation7 + $0x1c4] sm:$0xf0]  ;;  %v1672_v6 = vld [vmem:[#allocation7 + $0x54] sm:$0xf] }
  0x47   :  { %815 = vmatpush.bf16.msrb.mxu2 %v1453_v47  ;;  %v1342_v47 = vld [vmem:[#allocation7 + $0x78] sm:$0xf0]  ;;  %v1686_v0 = vld [vmem:[#allocation7 + $0xc4] sm:$0xf]  ;;  %v1465_v2 = vor.u32 %v1706_v61, %v1462_v63  ;;  %v1704_v9 = vld [vmem:[#allocation7 + $0x154] sm:$0xf] }
  0x48   :  { %v1345_v49 = vor.u32 %v1676_v46, %v1342_v47  ;;  %v1385_v3 = vor.u32 %v1686_v0, %v1382_v1  ;;  %v1684_v13 = vld [vmem:[#allocation7 + $0xb4] sm:$0xf]  ;;  %v1374_v14 = vld [vmem:[#allocation7 + $0xb8] sm:$0xf0]  ;;  %v1500_v17 = vld [vmem:[#allocation7 + $0x1b0] sm:$0xf] }
  0x49   :  { %365 = vmatpush.bf16.msrb.mxu3 %v1229_v48  ;;  %802 = vmatpush.bf16.msrb.mxu1 %v1381_v50  ;;  %v1525_v48 = vor.u32 %v1723_v45, %v1524_v43  ;;  %v1708_v50 = vld [vmem:[#allocation7 + $0x174] sm:$0xf]  ;;  %v1377_v15 = vor.u32 %v1684_v13, %v1374_v14  ;;  %v1318_v21 = vld [vmem:[#allocation7 + $0x48] sm:$0xf0]  ;;  %v1702_v22 = vld [vmem:[#allocation7 + $0x144] sm:$0xf] }
  0x4a   :  { %791 = vmatpush.bf16.msra.mxu0 %v1293_v30  ;;  %v1473_v53 = vor.u32 %v1708_v50, %v1470_v51  ;;  %v1366_v27 = vld [vmem:[#allocation7 + $0xa8] sm:$0xf0]  ;;  %v1492_v29 = vld [vmem:[#allocation7 + $0x1a0] sm:$0xf]  ;;  %v1715_v30 = vld [vmem:[#allocation7 + $0x1a4] sm:$0xf0] }
  0x4b   :  { %816 = vmatpush.bf16.msrb.mxu2 %v1445_v59  ;;  %v1517_v59 = vor.u32 %v1721_v57, %v1516_v56  ;;  %v1668_v31 = vld [vmem:[#allocation7 + $0x34] sm:$0xf]  ;;  %v1493_v32 = vor.u32 %v1715_v30, %v1492_v29  ;;  %v1310_v33 = vld [vmem:[#allocation7 + $0x38] sm:$0xf0]  ;;  %v1484_v39 = vld [vmem:[#allocation7 + $0x190] sm:$0xf] }
  0x4c   :  { %v1358_v38 = vld [vmem:[#allocation7 + $0x98] sm:$0xf0]  ;;  %v1666_v42 = vld [vmem:[#allocation7 + $0x24] sm:$0xf]  ;;  %v1302_v43 = vld [vmem:[#allocation7 + $0x28] sm:$0xf0] }
  0x4d   :  { %366 = vmatpush.bf16.msrb.mxu3 %v1213_v60  ;;  %803 = vmatpush.bf16.msrb.mxu1 %v1373_v62  ;;  %v1334_v60 = vld [vmem:[#allocation7 + $0x68] sm:$0xf0]  ;;  %v1305_v45 = vor.u32 %v1666_v42, %v1302_v43  ;;  %v1698_v46 = vld [vmem:[#allocation7 + $0x124] sm:$0xf]  ;;  %v2015_v52 = vld [vmem:[#allocation6] sm:$0xf] }
  0x4e   :  { %792 = vmatpush.bf16.msra.mxu0 %v1285_v41  ;;  %v1337_v62 = vor.u32 %v1674_v58, %v1334_v60  ;;  %v1713_v41 = vld [vmem:[#allocation7 + $0x194] sm:$0xf0]  ;;  %v1430_v47 = vld [vmem:[#allocation7 + $0x128] sm:$0xf0]  ;;  %v1711_v54 = vld [vmem:[#allocation7 + $0x184] sm:$0xf0] }
  0x4f   :  { %817 = vmatpush.bf16.msrb.mxu2 %v1437_v7  ;;  %v1509_v7 = vor.u32 %v1719_v5, %v1508_v4  ;;  %v1350_v50 = vld [vmem:[#allocation7 + $0x88] sm:$0xf0]  ;;  %v1294_v57 = vld [vmem:[#allocation7 + $0x18] sm:$0xf0]  ;;  %v1696_v58 = vld [vmem:[#allocation7 + $0x114] sm:$0xf] }
  0x50   :  { %v159_v60 = vperm.slane %v2015_v52, 1  ;;  %v1724_v63 = vld [vmem:[#allocation7 + $0x1f4] sm:$0xf]  ;;  %v1534_v0 = vld [vmem:[#allocation7 + $0x1f8] sm:$0xf0]  ;;  %v158_v13 = vperm.slane %v2015_v52, 0 }
  0x51   :  { %367 = vmatpush.bf16.msrb.mxu3 %v1197_v8  ;;  %804 = vmatpush.bf16.msrb.mxu1 %v1365_v10  ;;  %v1326_v8 = vld [vmem:[#allocation7 + $0x58] sm:$0xf0]  ;;  %v1286_v4 = vld [vmem:[#allocation7 + $0x8] sm:$0xf0]  ;;  %v1694_v5 = vld [vmem:[#allocation7 + $0x104] sm:$0xf] }
  0x52   :  { %841 = vmatpush.bf16.msrb.mxu0 %v1345_v49  ;;  %v1454_v10 = vld [vmem:[#allocation7 + $0x158] sm:$0xf0]  ;;  %v1329_v11 = vor.u32 %v1672_v6, %v1326_v8  ;;  %v1433_v49 = vor.u32 %v1698_v46, %v1430_v47  ;;  %v1722_v8 = vld [vmem:[#allocation7 + $0x1e4] sm:$0xf] }
  0x53   :  { %818 = vmatpush.bf16.msrb.mxu2 %v1429_v18  ;;  %v1457_v12 = vor.u32 %v1704_v9, %v1454_v10  ;;  %v1717_v18 = vld [vmem:[#allocation7 + $0x1b4] sm:$0xf0]  ;;  %v1526_v9 = vld [vmem:[#allocation7 + $0x1e8] sm:$0xf0]  ;;  %v1714_v43 = vld [vmem:[#allocation7 + $0x1a4] sm:$0xf] }
  0x55   :  { %368 = vmatpush.bf16.msrb.mxu3 %v1181_v19  ;;  %805 = vmatpush.bf16.msrb.mxu1 %v1357_v20  ;;  %v1670_v19 = vld [vmem:[#allocation7 + $0x44] sm:$0xf]  ;;  %v1501_v20 = vor.u32 %v1717_v18, %v1500_v17  ;;  %v1720_v18 = vld [vmem:[#allocation7 + $0x1d4] sm:$0xf] }
  0x56   :  { %842 = vmatpush.bf16.msrb.mxu0 %v1337_v62  ;;  %v1321_v24 = vor.u32 %v1670_v19, %v1318_v21  ;;  %v1518_v19 = vld [vmem:[#allocation7 + $0x1d8] sm:$0xf0] }
  0x57   :  { %819 = vmatpush.bf16.msrb.mxu2 %v1421_v34  ;;  %v1700_v34 = vld [vmem:[#allocation7 + $0x134] sm:$0xf]  ;;  %v1521_v21 = vor.u32 %v1720_v18, %v1518_v19  ;;  %v1737_v18 = vld [vmem:[#allocation9 + $0x58] sm:$0xff] }
  0x58   :  { %1281 = vmatmul.msk.bf16.vlgmr.msrb.gmra.mxu3 %vm302_vm1, %v2005_v16  ;;  %v1398_v16 = vld [vmem:[#allocation7 + $0xe8] sm:$0xf0]  ;;  %v1736_v19 = vld [vmem:[#allocation9 + $0x50] sm:$0xff] }
  0x59   :  { %806 = vmatpush.bf16.msrb.mxu1 %v1349_v23  ;;  %827 = vmatpush.bf16.msra.mxu3 %v1533_v35  ;;  %v1401_v37 = vor.u32 %v1690_v36, %v1398_v16  ;;  %v1446_v23 = vld [vmem:[#allocation7 + $0x148] sm:$0xf0]  ;;  %v1438_v35 = vld [vmem:[#allocation7 + $0x138] sm:$0xf0]  ;;  %v1313_v36 = vor.u32 %v1668_v31, %v1310_v33 }
  0x5a   :  { %843 = vmatpush.bf16.msrb.mxu0 %v1329_v11  ;;  %v1449_v25 = vor.u32 %v1702_v22, %v1446_v23  ;;  %v1441_v16 = vor.u32 %v1700_v34, %v1438_v35 }
  0x5b   :  { %820 = vmatpush.bf16.msrb.mxu2 %v1413_v44  ;;  %v1485_v44 = vor.u32 %v1713_v41, %v1484_v39 }
  0x5d   :  { %855 = vmatpush.bf16.msra.mxu1 %v1409_v26  ;;  %828 = vmatpush.bf16.msra.mxu3 %v1525_v48  ;;  %v1682_v26 = vld [vmem:[#allocation7 + $0xa4] sm:$0xf] }
  0x5e   :  { %v1369_v28 = vor.u32 %v1682_v26, %v1366_v27  ;;  %844 = vmatpush.bf16.msrb.mxu0 %v1321_v24  ;;  %v1678_v48 = vld [vmem:[#allocation7 + $0x84] sm:$0xf]  ;;  %v1510_v27 = vld [vmem:[#allocation7 + $0x1c8] sm:$0xf0] }
  0x5f   :  { %869 = vmatpush.bf16.msra.mxu2 %v1473_v53  ;;  %v1353_v51 = vor.u32 %v1678_v48, %v1350_v50  ;;  %v1476_v53 = vld [vmem:[#allocation7 + $0x180] sm:$0xf]  ;;  %v1718_v26 = vld [vmem:[#allocation7 + $0x1c4] sm:$0xf]  ;;  %v1712_v50 = vld [vmem:[#allocation7 + $0x194] sm:$0xf] }
  0x60   :  { %v1477_v56 = vor.u32 %v1711_v54, %v1476_v53  ;;  %v1513_v30 = vor.u32 %v1718_v26, %v1510_v27  ;;  %v1734_v26 = vld [vmem:[#allocation9 + $0x40] sm:$0xff] }
  0x61   :  { %856 = vmatpush.bf16.msra.mxu1 %v1401_v37  ;;  %829 = vmatpush.bf16.msra.mxu3 %v1517_v59  ;;  %v1680_v37 = vld [vmem:[#allocation7 + $0x94] sm:$0xf]  ;;  %v1422_v59 = vld [vmem:[#allocation7 + $0x118] sm:$0xf0] }
  0x62   :  { %v1361_v40 = vor.u32 %v1680_v37, %v1358_v38  ;;  %845 = vmatpush.bf16.msrb.mxu0 %v1313_v36  ;;  %v1425_v62 = vor.u32 %v1696_v58, %v1422_v59  ;;  %v1502_v37 = vld [vmem:[#allocation7 + $0x1b8] sm:$0xf0] }
  0x63   :  { %870 = vmatpush.bf16.msra.mxu2 %v1465_v2  ;;  %v1537_v2 = vor.u32 %v1724_v63, %v1534_v0 }
  0x65   :  { %857 = vmatpush.bf16.msra.mxu1 %v1393_v55  ;;  %830 = vmatpush.bf16.msra.mxu3 %v1509_v7  ;;  %v1664_v55 = vld [vmem:[#allocation7 + $0x14] sm:$0xf]  ;;  %v1414_v7 = vld [vmem:[#allocation7 + $0x108] sm:$0xf0] }
  0x66   :  { %846 = vmatpush.bf16.msrb.mxu0 %v1305_v45  ;;  %v1297_v61 = vor.u32 %v1664_v55, %v1294_v57  ;;  %v1417_v11 = vor.u32 %v1694_v5, %v1414_v7  ;;  %v1478_v57 = vld [vmem:[#allocation7 + $0x188] sm:$0xf0]  ;;  %v1733_v5 = vld [vmem:[#allocation9 + $0x38] sm:$0xff] }
  0x67   :  { %871 = vmatpush.bf16.msra.mxu2 %v1457_v12  ;;  %v1529_v12 = vor.u32 %v1722_v8, %v1526_v9  ;;  %v1731_v7 = vld [vmem:[#allocation9 + $0x28] sm:$0xff]  ;;  %v1729_v8 = vld [vmem:[#allocation9 + $0x18] sm:$0xff] }
  0x68   :  { %v1741_v9 = vld [vmem:[#allocation9 + $0x78] sm:$0xff] }
  0x69   :  { %858 = vmatpush.bf16.msra.mxu1 %v1385_v3  ;;  %831 = vmatpush.bf16.msra.mxu3 %v1501_v20  ;;  %v1662_v3 = vld [vmem:[#allocation7 + $0x4] sm:$0xf] }
  0x6a   :  { %847 = vmatpush.bf16.msrb.mxu0 %v1297_v61  ;;  %v1289_v6 = vor.u32 %v1662_v3, %v1286_v4 }
  0x6b   :  { %872 = vmatpush.bf16.msra.mxu2 %v1449_v25 }
  0x6d   :  { %859 = vmatpush.bf16.msra.mxu1 %v1377_v15  ;;  %832 = vmatpush.bf16.msra.mxu3 %v1493_v32  ;;  %v160_v15 = vperm.slane %v2015_v52, 2 }
  0x6e   :  { %848 = vmatpush.bf16.msrb.mxu0 %v1289_v6  ;;  %v1732_v6 = vld [vmem:[#allocation9 + $0x30] sm:$0xff] }
  0x6f   :  { %873 = vmatpush.bf16.msra.mxu2 %v1441_v16  ;;  %v1716_v16 = vld [vmem:[#allocation7 + $0x1b4] sm:$0xf] }
  0x71   :  { %860 = vmatpush.bf16.msra.mxu1 %v1369_v28  ;;  %833 = vmatpush.bf16.msra.mxu3 %v1485_v44  ;;  %v1494_v44 = vld [vmem:[#allocation7 + $0x1a8] sm:$0xf0] }
  0x72   :  { %v1497_v48 = vor.u32 %v1714_v43, %v1494_v44 }
  0x73   :  { %874 = vmatpush.bf16.msra.mxu2 %v1433_v49 }
  0x75   :  { %861 = vmatpush.bf16.msra.mxu1 %v1361_v40  ;;  %834 = vmatpush.bf16.msra.mxu3 %v1477_v56  ;;  %v1505_v40 = vor.u32 %v1716_v16, %v1502_v37  ;;  %v1710_v56 = vld [vmem:[#allocation7 + $0x184] sm:$0xf] }
  0x76   :  { %v1481_v58 = vor.u32 %v1710_v56, %v1478_v57 }
  0x77   :  { %875 = vmatpush.bf16.msra.mxu2 %v1425_v62 }
  0x79   :  { %862 = vmatpush.bf16.msra.mxu1 %v1353_v51  ;;  %883 = vmatpush.bf16.msrb.mxu3 %v1537_v2  ;;  %v1486_v51 = vld [vmem:[#allocation7 + $0x198] sm:$0xf0] }
  0x7a   :  { %v1489_v55 = vor.u32 %v1712_v50, %v1486_v51 }
  0x7b   :  { %876 = vmatpush.bf16.msra.mxu2 %v1417_v11  ;;  %v1740_v11 = vld [vmem:[#allocation9 + $0x70] sm:$0xff] }
  0x7d   :  { %884 = vmatpush.bf16.msrb.mxu3 %v1529_v12  ;;  %v1727_v12 = vld [vmem:[#allocation9 + $0x8] sm:$0xff] }
  0x81   :  { %885 = vmatpush.bf16.msrb.mxu3 %v1521_v21  ;;  %v459_v21 = vld [vmem:[%s2037_s4] sm:$0x3] }
  0x85   :  { %886 = vmatpush.bf16.msrb.mxu3 %v1513_v30 }
  0x89   :  { %887 = vmatpush.bf16.msrb.mxu3 %v1505_v40 }
  0x8d   :  { %888 = vmatpush.bf16.msrb.mxu3 %v1497_v48 }
  0x91   :  { %889 = vmatpush.bf16.msrb.mxu3 %v1489_v55 }
  0x95   :  { %890 = vmatpush.bf16.msrb.mxu3 %v1481_v58 }
  0xb9   :  { %v342_v1 = vpop.f32.mrf.mxu1 }
  0xba   :  { %v343_v10 = vadd.f32 %v342_v1, %v159_v60 }
  0xbc   :  { %v376_v20 = vmul.f32 0.1, %v343_v10 }
  0xbe   :  { %v384_v28 = vmax.f32 %v343_v10, %v376_v20  ;;  %v1728_v10 = vld [vmem:[#allocation9 + $0x10] sm:$0xff] }
  0xbf   :  { %v328_v14 = vpop.f32.mrf.mxu3 }
  0xc0   :  { %v329_v22 = vadd.f32 %v328_v14, %v158_v13  ;;  %v1726_v14 = vld [vmem:[#allocation9] sm:$0xff] }
  0xc1   :  { %v356_v17 = vpop.f32.mrf.mxu2  ;;  %v344_v23 = vpop.f32.mrf.mxu1 }
  0xc2   :  { %v357_v24 = vadd.f32 %v356_v17, %v160_v15  ;;  %v345_v25 = vadd.f32 %v344_v23, %v159_v60  ;;  %v375_v31 = vmul.f32 0.1, %v329_v22  ;;  %v161_v60 = vperm.slane %v2015_v52, 3  ;;  %v1730_v52 = vld [vmem:[#allocation9 + $0x20] sm:$0xff]  ;;  %v1735_v23 = vld [vmem:[#allocation9 + $0x48] sm:$0xff] }
  0xc4   :  { %v380_v29 = vmul.f32 0.1, %v345_v25  ;;  %v377_v32 = vmul.f32 0.1, %v357_v24  ;;  %v383_v41 = vmax.f32 %v329_v22, %v375_v31 }
  0xc6   :  { %v388_v33 = vmax.f32 %v345_v25, %v380_v29  ;;  %v385_v45 = vmax.f32 %v357_v24, %v377_v32  ;;  %v461_v24 = vperm.slane %v459_v21, 0 }
  0xc7   :  { %v330_v34 = vpop.f32.mrf.mxu3 }
  0xc8   :  { %v331_v35 = vadd.f32 %v330_v34, %v158_v13  ;;  %v392_v39 = vpack.c.bf16 %v388_v33, %v384_v28  ;;  %v1739_v13 = vld [vmem:[#allocation9 + $0x68] sm:$0xff] }
  0xc9   :  { %v358_v36 = vpop.f32.mrf.mxu2 }
  0xca   :  { %v359_v38 = vadd.f32 %v358_v36, %v160_v15  ;;  %v379_v42 = vmul.f32 0.1, %v331_v35  ;;  %807 = vmatmul.bf16.vlgmr.msrb.gmra.mxu1 %v392_v39  ;;  %v1738_v15 = vld [vmem:[#allocation9 + $0x60] sm:$0xff] }
  0xcb   :  { %1053 = vmatpush.bf16.msrb.mxu1 %v1741_v9 }
  0xcc   :  { %v381_v46 = vmul.f32 0.1, %v359_v38  ;;  %v387_v47 = vmax.f32 %v331_v35, %v379_v42 }
  0xce   :  { %v389_v49 = vmax.f32 %v359_v38, %v381_v46  ;;  %v391_v53 = vpack.c.bf16 %v387_v47, %v383_v41  ;;  %v462_v38 = vperm.slane %v459_v21, 1 }
  0xcf   :  { %1054 = vmatpush.bf16.msrb.mxu1 %v1740_v11 }
  0xd0   :  { %v393_v54 = vpack.c.bf16 %v389_v49, %v385_v45  ;;  %793 = vmatmul.bf16.vlgmr.msra.gmra.mxu0 %v391_v53 }
  0xd1   :  { %1039 = vmatpush.bf16.msra.mxu0 %v1733_v5  ;;  %v1746_v5 = vld [vmem:[#allocation10 + $0x20] sm:$0xff] }
  0xd2   :  { %821 = vmatmul.bf16.vlgmr.msrb.gmra.mxu2 %v393_v54 }
  0xd3   :  { %1055 = vmatpush.bf16.msrb.mxu1 %v1739_v13 }
  0xd5   :  { %1040 = vmatpush.bf16.msra.mxu0 %v1732_v6  ;;  %v1745_v6 = vld [vmem:[#allocation10 + $0x18] sm:$0xff] }
  0xd7   :  { %1056 = vmatpush.bf16.msrb.mxu1 %v1738_v15 }
  0xd9   :  { %1041 = vmatpush.bf16.msra.mxu0 %v1731_v7  ;;  %v1744_v7 = vld [vmem:[#allocation10 + $0x10] sm:$0xff] }
  0xda   :  { %863 = vmatmul.bf16.vlgmr.msra.gmra.mxu1 %v392_v39 }
  0xdb   :  { %v370_v59 = vpop.f32.mrf.mxu3  ;;  %1057 = vmatpush.bf16.msrb.mxu1 %v1737_v18 }
  0xdc   :  { %v371_v61 = vadd.f32 %v370_v59, %v161_v60 }
  0xdd   :  { %1042 = vmatpush.bf16.msra.mxu0 %v1730_v52  ;;  %v1743_v52 = vld [vmem:[#allocation10 + $0x8] sm:$0xff] }
  0xde   :  { %v378_v63 = vmul.f32 0.1, %v371_v61 }
  0xdf   :  { %1058 = vmatpush.bf16.msrb.mxu1 %v1736_v19 }
  0xe0   :  { %849 = vmatmul.bf16.vlgmr.msrb.gmra.mxu0 %v391_v53  ;;  %v386_v2 = vmax.f32 %v371_v61, %v378_v63 }
  0xe1   :  { %1043 = vmatpush.bf16.msra.mxu0 %v1729_v8  ;;  %v1742_v8 = vld [vmem:[#allocation10] sm:$0xff] }
  0xe2   :  { %877 = vmatmul.bf16.vlgmr.msra.gmra.mxu2 %v393_v54 }
  0xe3   :  { %v372_v62 = vpop.f32.mrf.mxu3  ;;  %1059 = vmatpush.bf16.msrb.mxu1 %v1735_v23 }
  0xe4   :  { %v373_v0 = vadd.f32 %v372_v62, %v161_v60 }
  0xe5   :  { %1044 = vmatpush.bf16.msra.mxu0 %v1728_v10  ;;  %v1767_v10 = vld [vmem:[%s2039_s6] ss:$0 sm:$0xff] }
  0xe6   :  { %v382_v1 = vmul.f32 0.1, %v373_v0 }
  0xe7   :  { %1060 = vmatpush.bf16.msrb.mxu1 %v1734_v26 }
  0xe8   :  { %v390_v3 = vmax.f32 %v373_v0, %v382_v1 }
  0xe9   :  { %1045 = vmatpush.bf16.msra.mxu0 %v1727_v12 }
  0xea   :  { %v394_v4 = vpack.c.bf16 %v390_v3, %v386_v2  ;;  %v1749_v2 = vld [vmem:[#allocation10 + $0x38] sm:$0xff]  ;;  %v1748_v3 = vld [vmem:[#allocation10 + $0x30] sm:$0xff] }
  0xeb   :  { %1140 = vmatpush.bf16.msrb.mxu2 %v1749_v2 }
  0xec   :  { %835 = vmatmul.bf16.vlgmr.msra.gmra.mxu3 %v394_v4 }
  0xed   :  { %1046 = vmatpush.bf16.msra.mxu0 %v1726_v14 }
  0xef   :  { %1141 = vmatpush.bf16.msrb.mxu2 %v1748_v3 }
  0xfc   :  { %891 = vmatmul.bf16.vlgmr.msrb.gmra.mxu3 %v394_v4  ;;  %v1747_v4 = vld [vmem:[#allocation10 + $0x28] sm:$0xff] }
  0xfd   :  { %1142 = vmatpush.bf16.msrb.mxu2 %v1747_v4 }
 0x101   :  { %1143 = vmatpush.bf16.msrb.mxu2 %v1746_v5 }
 0x105   :  { %1144 = vmatpush.bf16.msrb.mxu2 %v1745_v6 }
 0x109   :  { %1145 = vmatpush.bf16.msrb.mxu2 %v1744_v7 }
 0x10d   :  { %1146 = vmatpush.bf16.msrb.mxu2 %v1743_v52 }
 0x111   :  { %1147 = vmatpush.bf16.msrb.mxu2 %v1742_v8 }
 0x147   :  { %v808_v20 = vpop.f32.mrf.mxu1 }
 0x14d   :  { %v794_v17 = vpop.f32.mrf.mxu0 }
 0x14e   :  { %v795_v27 = vadd.f32 %v794_v17, %v461_v24 }
 0x14f   :  { %v810_v28 = vpop.f32.mrf.mxu1 }
 0x150   :  { %v809_v31 = vadd.f32 %v808_v20, %v795_v27 }
 0x155   :  { %v822_v22 = vpop.f32.mrf.mxu2  ;;  %v796_v25 = vpop.f32.mrf.mxu0 }
 0x156   :  { %v797_v32 = vadd.f32 %v796_v25, %v461_v24  ;;  %v823_v33 = vadd.f32 %v822_v22, %v809_v31  ;;  %v1768_v25 = vld [vmem:[%s2041_s8] ss:$0 sm:$0xff] }
 0x157   :  { %v864_v41 = vpop.f32.mrf.mxu1 }
 0x158   :  { %v811_v35 = vadd.f32 %v810_v28, %v797_v32 }
 0x15d   :  { %v824_v29 = vpop.f32.mrf.mxu2  ;;  %v850_v34 = vpop.f32.mrf.mxu0 }
 0x15e   :  { %v825_v16 = vadd.f32 %v824_v29, %v811_v35  ;;  %v851_v44 = vadd.f32 %v850_v34, %v462_v38 }
 0x15f   :  { %v866_v54 = vpop.f32.mrf.mxu1 }
 0x160   :  { %v865_v50 = vadd.f32 %v864_v41, %v851_v44 }
 0x165   :  { %v878_v42 = vpop.f32.mrf.mxu2  ;;  %v852_v47 = vpop.f32.mrf.mxu0 }
 0x166   :  { %v853_v51 = vadd.f32 %v852_v47, %v462_v38  ;;  %v879_v53 = vadd.f32 %v878_v42, %v865_v50 }
 0x168   :  { %v867_v56 = vadd.f32 %v866_v54, %v853_v51 }
 0x16d   :  { %v880_v55 = vpop.f32.mrf.mxu2 }
 0x16e   :  { %v881_v58 = vadd.f32 %v880_v55, %v867_v56 }
 0x16f   :  { %v836_v30 = vpop.f32.mrf.mxu3 }
 0x170   :  { %v837_v36 = vadd.f32 %v836_v30, %v823_v33 }
 0x172   :  { %v897_v39 = vmul.f32 0.1, %v837_v36 }
 0x174   :  { %v901_v45 = vmax.f32 %v837_v36, %v897_v39 }
 0x177   :  { %v838_v37 = vpop.f32.mrf.mxu3 }
 0x178   :  { %v839_v40 = vadd.f32 %v838_v37, %v825_v16 }
 0x17a   :  { %v899_v43 = vmul.f32 0.1, %v839_v40 }
 0x17c   :  { %v903_v46 = vmax.f32 %v839_v40, %v899_v43 }
 0x17e   :  { %v905_v48 = vpack.c.bf16 %v903_v46, %v901_v45 }
 0x17f   :  { %v892_v49 = vpop.f32.mrf.mxu3 }
 0x180   :  { %1047 = vmatmul.bf16.vlgmr.msra.gmra.mxu0 %v905_v48  ;;  %v893_v57 = vadd.f32 %v892_v49, %v879_v53 }
 0x182   :  { %v898_v60 = vmul.f32 0.1, %v893_v57 }
 0x184   :  { %v902_v63 = vmax.f32 %v893_v57, %v898_v60 }
 0x187   :  { %v894_v59 = vpop.f32.mrf.mxu3 }
 0x188   :  { %v895_v61 = vadd.f32 %v894_v59, %v881_v58 }
 0x18a   :  { %v900_v62 = vmul.f32 0.1, %v895_v61 }
 0x18c   :  { %v904_v0 = vmax.f32 %v895_v61, %v900_v62 }
 0x18e   :  { %v906_v1 = vpack.c.bf16 %v904_v0, %v902_v63 }
 0x190   :  { %1061 = vmatmul.bf16.vlgmr.msrb.gmra.mxu1 %v906_v1 }
 0x1fd   :  { %v1048_v9 = vpop.f32.mrf.mxu0 }
 0x1fe   :  { %v1049_v12 = vadd.f32 %v1767_v10, %v1048_v9 }
 0x205   :  { %v1050_v13 = vpop.f32.mrf.mxu0 }
 0x206   :  { %v1051_v15 = vadd.f32 %v1767_v10, %v1050_v13 }
 0x20d   :  { %v1062_v11 = vpop.f32.mrf.mxu1 }
 0x20e   :  { %v1063_v14 = vadd.f32 %v1062_v11, %v1049_v12 }
 0x210   :  { %v1067_v18 = vmul.f32 0.1, %v1063_v14 }
 0x212   :  { %v1069_v21 = vmax.f32 %v1063_v14, %v1067_v18 }
 0x215   :  { %v1064_v17 = vpop.f32.mrf.mxu1 }
 0x216   :  { %v1065_v19 = vadd.f32 %v1064_v17, %v1051_v15 }
 0x218   :  { %v1068_v20 = vmul.f32 0.1, %v1065_v19 }
 0x21a   :  { %v1070_v22 = vmax.f32 %v1065_v19, %v1068_v20 }
 0x21c   :  { %v1071_v23 = vpack.c.bf16 %v1070_v22, %v1069_v21 }
 0x21e   :  { %1148 = vmatmul.bf16.vlgmr.msrb.gmra.mxu2 %v1071_v23 }
 0x2a1   :  { %v1149_v24 = vpop.f32.mrf.mxu2 }
 0x2a2   :  { %v1150_v27 = vadd.f32 %v1768_v25, %v1149_v24 }
 0x2a9   :  { %v1151_v26 = vpop.f32.mrf.mxu2 }
 0x2aa   :  { %v1152_v28 = vadd.f32 %v1768_v25, %v1151_v26 }
 0x2ac   :  { %v1753_v29 = vpack.c.bf16 %v1152_v28, %v1150_v27 }
 0x2ae   :  { %1754 = vst [vmem:[%s2042_s9] sm:$0xff] %v1753_v29  }
 0x2af   :  { %1162 = vsyncpa [#allocation3], 1 }
 0x2b0   :  { %1163 = vsyncpa [#allocation5], 1 }
 0x2b1   :  { %1164 = vsyncpa [#allocation8], 1 }
 0x2b2   :  { %1165 = vsyncpa [#allocation11], 1 }

</bundles_post_ra>
